<compile_context>
chip_gen: v7x
topology: tpu7x:2x2x1
jax: 0.10.0
libtpu: 0.0.40
codegen_flags: <defaults>
</compile_context>

<pallas_src>
import functools
import math

import jax
import jax.numpy as jnp
from jax.experimental import pallas as pl
from jax.experimental.pallas import tpu as pltpu

_LANE = 128
_SUBLANE = 8
_MASK_VALUE = -1e30


def _round_up(x, m):
    return ((x + m - 1) // m) * m


def _const_block_spec(shape):
    """Grid-invariant block: request single buffering (double buffer buys nothing)."""
    index_map = lambda b, i, j: (0,) * len(shape)
    try:
        return pl.BlockSpec(shape, index_map, pipeline_mode=pl.Buffered(1))
    except (TypeError, AttributeError):   # older jax without BlockSpec.pipeline_mode
        return pl.BlockSpec(shape, index_map)


def _mha_kernel(q_ref, kp_ref, v_ref, wqT_ref, bq_ref, o_ref,
                qp_sc, m_sc, l_sc, acc_sc, *, scale, s2, tk, matmul_dtype):
    # Per grid step (b, qi, ki):
    #   q_ref:   (1, TQ, d_model)   raw query tile
    #   kp_ref:  (1, TK, d_k_pad)   key tile already projected in the wrapper (matmul dtype)
    #   v_ref:   (1, TK, E_pad)     value tile (matmul dtype)
    #   wqT_ref: (d_model, d_k_pad) pre-transposed, zero-padded Q weights
    #   bq_ref:  (1, d_k_pad)       zero-padded Q bias (f32)
    #   o_ref:   (1, TQ, E_pad)     output tile, written on the last key tile
    ki = pl.program_id(2)

    @pl.when(ki == 0)
    def _():
        # Project the query tile once per (batch, query-tile); reuse across key tiles.
        qp = jnp.dot(q_ref[0], wqT_ref[...], preferred_element_type=jnp.float32)
        qp = (qp + bq_ref[...]) * scale     # fold 1/sqrt(d_k) into the small (TQ,d_k) tensor
        qp_sc[...] = qp.astype(qp_sc.dtype)
        m_sc[...] = jnp.full_like(m_sc, -jnp.inf)
        l_sc[...] = jnp.zeros_like(l_sc)
        acc_sc[...] = jnp.zeros_like(acc_sc)

    # scores = qp @ kp^T without an explicit transpose (contract last dims on both).
    s = jax.lax.dot_general(
        qp_sc[...], kp_ref[0],
        dimension_numbers=(((1,), (1,)), ((), ())),
        preferred_element_type=jnp.float32,
    )                                       # (TQ, TK) f32

    if s2 % tk != 0:
        # Mask zero-padded key positions (only the last key tile has any).
        col = jax.lax.broadcasted_iota(jnp.int32, s.shape, 1)
        s = jnp.where(col < (s2 - ki * tk), s, _MASK_VALUE)

    # Online (flash-style) softmax update; statistics and accumulator stay in f32.
    m_prev = m_sc[...]
    m_new = jnp.maximum(m_prev, jnp.max(s, axis=-1, keepdims=True))
    alpha = jnp.exp(m_prev - m_new)
    p = jnp.exp(s - m_new)
    l_sc[...] = alpha * l_sc[...] + jnp.sum(p, axis=-1, keepdims=True)
    acc_sc[...] = alpha * acc_sc[...] + jnp.dot(
        p.astype(matmul_dtype), v_ref[0], preferred_element_type=jnp.float32)
    m_sc[...] = m_new

    @pl.when(ki == pl.num_programs(2) - 1)
    def _():
        inv_l = pl.reciprocal(l_sc[...], approx=True)   # EUP slot, off the VPU path
        o_ref[0] = (acc_sc[...] * inv_l).astype(o_ref.dtype)


def multi_headed_attention(query, key, value, wq, bq, wk, bk, *,
                           tq=128, tk=256, matmul_dtype=jnp.bfloat16):
    """query: (B,S1,d_model), key: (B,S2,d_model), value: (B,S2,E) -> (B,S1,E).

    wq, wk: (d_k, d_model) PyTorch nn.Linear weight layout (y = x @ W.T + b).
    tq/tk: query/key tile sizes (tq=256 is worth trying on v6e's 128 MiB VMEM; keep 128
    on v7x).  matmul_dtype=jnp.float32 restores exact-f32 matmul operands.
    """
    B, S1, d_model = query.shape
    _, S2, _ = key.shape
    E = value.shape[-1]
    d_k = wq.shape[0]
    scale = 1.0 / math.sqrt(d_k)

    # Lane-dense padding of the contraction/output feature dims (zero columns are inert);
    # skipped when already aligned to avoid extra HBM passes.
    d_k_pad = d_k if d_k % _LANE == 0 else _round_up(d_k, _LANE)
    e_pad = E if E % _LANE == 0 else _round_up(E, _LANE)

    # Bounded tiles (no tq=S1 fallback); sequence lengths padded to whole tiles.
    tq = min(tq, _round_up(S1, _SUBLANE))
    tk = min(tk, _round_up(S2, _SUBLANE))
    s1p = _round_up(S1, tq)
    s2p = _round_up(S2, tk)
    pad_s1, pad_s2 = s1p - S1, s2p - S2
    pad_dk, pad_e = d_k_pad - d_k, e_pad - E

    q_in = jnp.pad(query, ((0, 0), (0, pad_s1), (0, 0))) if pad_s1 else query
    key_in = jnp.pad(key, ((0, 0), (0, pad_s2), (0, 0))) if pad_s2 else key
    v_in = (jnp.pad(value, ((0, 0), (0, pad_s2), (0, pad_e)))
            if (pad_s2 or pad_e) else value)
    v_in = v_in.astype(matmul_dtype)

    # Pre-transposed, zero-padded projection weights (plain x @ W feeds the MXU).
    wqT = wq.T.astype(query.dtype)
    wkT = wk.T.astype(key.dtype)
    bq_f = bq.astype(jnp.float32)
    bk_f = bk.astype(jnp.float32)
    if pad_dk:
        wqT = jnp.pad(wqT, ((0, 0), (0, pad_dk)))
        wkT = jnp.pad(wkT, ((0, 0), (0, pad_dk)))
        bq_f = jnp.pad(bq_f, (0, pad_dk))
        bk_f = jnp.pad(bk_f, (0, pad_dk))
    bq2 = bq_f.reshape(1, d_k_pad)

    # K projection hoisted out of the kernel: one XLA matmul per call instead of once
    # per query tile inside the kernel.  Keep it exact when the kernel runs in f32.
    kproj_prec = (jax.lax.Precision.HIGHEST
                  if jnp.dtype(matmul_dtype) == jnp.dtype(jnp.float32) else None)
    kp = (jnp.matmul(key_in, wkT, precision=kproj_prec) + bk_f).astype(matmul_dtype)

    grid = (B, s1p // tq, s2p // tk)
    n_q, n_k = grid[1], grid[2]

    # Scoped-VMEM budget from the actual block footprint (+ headroom for intermediates).
    itm_in = jnp.dtype(query.dtype).itemsize
    itm_mm = jnp.dtype(matmul_dtype).itemsize
    block_bytes = (
        2 * tq * d_model * itm_in          # query tile (double-buffered)
        + 2 * tk * d_k_pad * itm_mm        # projected-key tile
        + 2 * tk * e_pad * itm_mm          # value tile
        + 1 * d_model * d_k_pad * itm_in   # wqT (single-buffered)
        + 1 * d_k_pad * 4                  # bq
        + 2 * tq * e_pad * itm_in          # output tile
        + tq * d_k_pad * itm_mm            # qp scratch
        + 2 * tq * 4                       # running max / denom scratch
        + tq * e_pad * 4                   # output accumulator scratch
        + 6 * tq * tk * 4                  # scores / exp / mask intermediates headroom
    )
    vmem_limit = int(min(64 * 1024 * 1024, max(2 * block_bytes, 32 * 1024 * 1024)))

    flops = 2 * B * s1p * d_model * d_k_pad + 2 * B * s1p * s2p * (d_k_pad + e_pad)
    transcendentals = B * s1p * s2p + B * s1p * n_k
    bytes_accessed = (q_in.size * itm_in
                      + n_q * (kp.size + v_in.size) * itm_mm
                      + wqT.size * itm_in + bq2.size * 4
                      + B * s1p * e_pad * itm_in)

    grid_spec = pltpu.PrefetchScalarGridSpec(
        num_scalar_prefetch=0,
        grid=grid,
        in_specs=[
            pl.BlockSpec((1, tq, d_model), lambda b, i, j: (b, i, 0)),
            pl.BlockSpec((1, tk, d_k_pad), lambda b, i, j: (b, j, 0)),
            pl.BlockSpec((1, tk, e_pad), lambda b, i, j: (b, j, 0)),
            _const_block_spec((d_model, d_k_pad)),
            _const_block_spec((1, d_k_pad)),
        ],
        out_specs=pl.BlockSpec((1, tq, e_pad), lambda b, i, j: (b, i, 0)),
        scratch_shapes=[
            pltpu.VMEM((tq, d_k_pad), matmul_dtype),   # projected query tile
            pltpu.VMEM((tq, 1), jnp.float32),          # running max
            pltpu.VMEM((tq, 1), jnp.float32),          # running denominator
            pltpu.VMEM((tq, e_pad), jnp.float32),      # output accumulator
        ],
    )

    out_padded = pl.pallas_call(
        functools.partial(_mha_kernel, scale=scale, s2=S2, tk=tk,
                          matmul_dtype=matmul_dtype),
        out_shape=jax.ShapeDtypeStruct((B, s1p, e_pad), query.dtype),
        grid_spec=grid_spec,
        compiler_params=pltpu.CompilerParams(
            dimension_semantics=("parallel", "parallel", "arbitrary"),
            vmem_limit_bytes=vmem_limit),
        cost_estimate=pl.CostEstimate(
            flops=int(flops),
            transcendentals=int(transcendentals),
            bytes_accessed=int(bytes_accessed)),
    )(q_in, kp, v_in, wqT, bq2)

    if pad_s1 or pad_e:
        return out_padded[:, :S1, :E]
    return out_padded


def _reference(query, key, value, wq, bq, wk, bk):
    qp = query @ wq.T + bq
    kp = key @ wk.T + bk
    d_k = qp.shape[-1]
    scores = jnp.einsum("bqd,bkd->bqk", qp, kp) / math.sqrt(d_k)
    p = jax.nn.softmax(scores, axis=-1)
    return jnp.einsum("bqk,bke->bqe", p, value)


if __name__ == "__main__":
    d_model, d_k, E = 32, 16, 32
    bound = 1.0 / math.sqrt(d_model)

    root = jax.random.PRNGKey(0)
    kparam, kdata1, kdata2 = jax.random.split(root, 3)
    kw1, kw2, kw3, kw4 = jax.random.split(kparam, 4)
    wq = jax.random.uniform(kw1, (d_k, d_model), jnp.float32, -bound, bound)
    bq = jax.random.uniform(kw2, (d_k,), jnp.float32, -bound, bound)
    wk = jax.random.uniform(kw3, (d_k, d_model), jnp.float32, -bound, bound)
    bk = jax.random.uniform(kw4, (d_k,), jnp.float32, -bound, bound)

    # Case 1: aligned small shapes, default bf16 matmul operands (fast path).
    B, S1, S2 = 2, 8, 8
    k1, k2, k3 = jax.random.split(kdata1, 3)
    query = jax.random.normal(k1, (B, S1, d_model), jnp.float32)
    key_t = jax.random.normal(k2, (B, S2, d_model), jnp.float32)
    value = jax.random.normal(k3, (B, S2, E), jnp.float32)

    out = jax.block_until_ready(
        multi_headed_attention(query, key_t, value, wq, bq, wk, bk))
    ref = _reference(query, key_t, value, wq, bq, wk, bk)
    assert out.shape == (B, S1, E)
    # bf16 matmul operands + EUP approx reciprocal -> relaxed tolerance.
    assert jnp.allclose(out, ref, atol=5e-2, rtol=5e-2), float(jnp.max(jnp.abs(out - ref)))

    # Case 2: ragged shapes (exercise S1/S2 padding + key masking), exact f32 matmuls.
    B, S1, S2 = 2, 10, 12
    k1, k2, k3 = jax.random.split(kdata2, 3)
    query = jax.random.normal(k1, (B, S1, d_model), jnp.float32)
    key_t = jax.random.normal(k2, (B, S2, d_model), jnp.float32)
    value = jax.random.normal(k3, (B, S2, E), jnp.float32)

    out = jax.block_until_ready(
        multi_headed_attention(query, key_t, value, wq, bq, wk, bk,
                               matmul_dtype=jnp.float32))
    ref = _reference(query, key_t, value, wq, bq, wk, bk)
    assert out.shape == (B, S1, E)
    assert jnp.allclose(out, ref, atol=5e-3, rtol=5e-3), float(jnp.max(jnp.abs(out - ref)))

    print("KERNEL_OK")
</pallas_src>

<mosaic_0001>
module attributes {stable_mosaic.version = 11 : i64} {
  func.func @_mha_kernel(%arg0: i32, %arg1: i32, %arg2: i32, %arg3: memref<1x8x32xf32, #tpu.memory_space<vmem>>, %arg4: memref<1x8x128xbf16, #tpu.memory_space<vmem>>, %arg5: memref<1x8x128xbf16, #tpu.memory_space<vmem>>, %arg6: memref<32x128xf32, #tpu.memory_space<vmem>>, %arg7: memref<1x128xf32, #tpu.memory_space<vmem>>, %arg8: memref<1x8x128xf32, #tpu.memory_space<vmem>>, %arg9: memref<8x128xbf16, #tpu.memory_space<vmem>>, %arg10: memref<8x1xf32, #tpu.memory_space<vmem>>, %arg11: memref<8x1xf32, #tpu.memory_space<vmem>>, %arg12: memref<8x128xf32, #tpu.memory_space<vmem>>) attributes {dimension_semantics = [#tpu.dimension_semantics<parallel>, #tpu.dimension_semantics<parallel>, #tpu.dimension_semantics<arbitrary>], iteration_bounds = array<i64: 2, 1, 1>, scalar_prefetch = 0 : i64, scratch_operands = 4 : i64, tpu.core_type = #tpu.core_type<tc>, window_params = [{transform_indices = @transform_0, window_bounds = array<i64: 1, 8, 32>}, {transform_indices = @transform_1, window_bounds = array<i64: 1, 8, 128>}, {transform_indices = @transform_2, window_bounds = array<i64: 1, 8, 128>}, {pipeline_mode = #tpu.pipeline_mode<synchronous>, transform_indices = @transform_3, window_bounds = array<i64: 32, 128>}, {pipeline_mode = #tpu.pipeline_mode<synchronous>, transform_indices = @transform_4, window_bounds = array<i64: 1, 128>}, {transform_indices = @transform_5, window_bounds = array<i64: 1, 8, 128>}]} {
    %c0_i32 = arith.constant 0 : i32
    %0 = arith.cmpi eq, %arg2, %c0_i32 : i32
    %1 = arith.extui %0 : i1 to i32
    %c0_i32_0 = arith.constant 0 : i32
    %2 = arith.cmpi ne, %1, %c0_i32_0 : i32
    scf.if %2 {
      %c0_25 = arith.constant 0 : index
      %c0_26 = arith.constant 0 : index
      %c0_27 = arith.constant 0 : index
      %35 = vector.load %arg3[%c0_25, %c0_26, %c0_27] : memref<1x8x32xf32, #tpu.memory_space<vmem>>, vector<1x8x32xf32>
      %36 = vector.shape_cast %35 : vector<1x8x32xf32> to vector<8x32xf32>
      %c0_28 = arith.constant 0 : index
      %c0_29 = arith.constant 0 : index
      %37 = vector.load %arg6[%c0_28, %c0_29] : memref<32x128xf32, #tpu.memory_space<vmem>>, vector<32x128xf32>
      %cst_30 = arith.constant dense<0.000000e+00> : vector<8x128xf32>
      %38 = tpu.matmul %36, %37, %cst_30 {dimension_numbers = #tpu.dot_dimension_numbers<[1], [0], [0], [1], [0, 0, 1, 1], [], []>} : vector<8x32xf32>, vector<32x128xf32>, vector<8x128xf32> -> vector<8x128xf32>
      %c0_31 = arith.constant 0 : index
      %c0_32 = arith.constant 0 : index
      %39 = vector.load %arg7[%c0_31, %c0_32] : memref<1x128xf32, #tpu.memory_space<vmem>>, vector<1x128xf32>
      %40 = vector.broadcast %39 : vector<1x128xf32> to vector<8x128xf32>
      %41 = arith.addf %38, %40 : vector<8x128xf32>
      %cst_33 = arith.constant 2.500000e-01 : f32
      %42 = vector.broadcast %cst_33 : f32 to vector<8x128xf32>
      %43 = arith.mulf %41, %42 : vector<8x128xf32>
      %44 = arith.truncf %43 : vector<8x128xf32> to vector<8x128xbf16>
      %c0_34 = arith.constant 0 : index
      %c0_35 = arith.constant 0 : index
      %45 = vector.load %arg9[%c0_34, %c0_35] : memref<8x128xbf16, #tpu.memory_space<vmem>>, vector<8x128xbf16>
      tpu.vector_store %arg9[%c0_34, %c0_35], %44 {strides = array<i32>} : memref<8x128xbf16, #tpu.memory_space<vmem>>, vector<8x128xbf16>,
      %cst_36 = arith.constant 0xFF800000 : f32
      %46 = vector.broadcast %cst_36 : f32 to vector<8x1xf32>
      %c0_37 = arith.constant 0 : index
      %c0_38 = arith.constant 0 : index
      %47 = vector.load %arg10[%c0_37, %c0_38] : memref<8x1xf32, #tpu.memory_space<vmem>>, vector<8x1xf32>
      tpu.vector_store %arg10[%c0_37, %c0_38], %46 {strides = array<i32>} : memref<8x1xf32, #tpu.memory_space<vmem>>, vector<8x1xf32>,
      %cst_39 = arith.constant 0.000000e+00 : f32
      %48 = vector.broadcast %cst_39 : f32 to vector<8x1xf32>
      %c0_40 = arith.constant 0 : index
      %c0_41 = arith.constant 0 : index
      %49 = vector.load %arg11[%c0_40, %c0_41] : memref<8x1xf32, #tpu.memory_space<vmem>>, vector<8x1xf32>
      tpu.vector_store %arg11[%c0_40, %c0_41], %48 {strides = array<i32>} : memref<8x1xf32, #tpu.memory_space<vmem>>, vector<8x1xf32>,
      %cst_42 = arith.constant 0.000000e+00 : f32
      %50 = vector.broadcast %cst_42 : f32 to vector<8x128xf32>
      %c0_43 = arith.constant 0 : index
      %c0_44 = arith.constant 0 : index
      %51 = vector.load %arg12[%c0_43, %c0_44] : memref<8x128xf32, #tpu.memory_space<vmem>>, vector<8x128xf32>
      tpu.vector_store %arg12[%c0_43, %c0_44], %50 {strides = array<i32>} : memref<8x128xf32, #tpu.memory_space<vmem>>, vector<8x128xf32>,
    } else {
    }
    %c0 = arith.constant 0 : index
    %c0_1 = arith.constant 0 : index
    %3 = vector.load %arg9[%c0, %c0_1] : memref<8x128xbf16, #tpu.memory_space<vmem>>, vector<8x128xbf16>
    %c0_2 = arith.constant 0 : index
    %c0_3 = arith.constant 0 : index
    %c0_4 = arith.constant 0 : index
    %4 = vector.load %arg4[%c0_2, %c0_3, %c0_4] : memref<1x8x128xbf16, #tpu.memory_space<vmem>>, vector<1x8x128xbf16>
    %5 = vector.shape_cast %4 : vector<1x8x128xbf16> to vector<8x128xbf16>
    %cst = arith.constant dense<0.000000e+00> : vector<8x8xf32>
    %6 = tpu.matmul %3, %5, %cst {dimension_numbers = #tpu.dot_dimension_numbers<[1], [1], [0], [0], [0, 0, 1, 0], [], []>} : vector<8x128xbf16>, vector<8x128xbf16>, vector<8x8xf32> -> vector<8x8xf32>
    %c0_5 = arith.constant 0 : index
    %c0_6 = arith.constant 0 : index
    %7 = vector.load %arg10[%c0_5, %c0_6] : memref<8x1xf32, #tpu.memory_space<vmem>>, vector<8x1xf32>
    %cst_7 = arith.constant dense<0xFF800000> : vector<8xf32>
    %8 = vector.multi_reduction <maximumf>, %6, %cst_7 [1] : vector<8x8xf32> to vector<8xf32>
    %9 = vector.shape_cast %8 : vector<8xf32> to vector<8x1xf32>
    %10 = arith.maximumf %7, %9 : vector<8x1xf32>
    %11 = arith.subf %7, %10 : vector<8x1xf32>
    %12 = math.exp %11 : vector<8x1xf32>
    %13 = vector.broadcast %10 : vector<8x1xf32> to vector<8x8xf32>
    %14 = arith.subf %6, %13 : vector<8x8xf32>
    %15 = math.exp %14 : vector<8x8xf32>
    %c0_8 = arith.constant 0 : index
    %c0_9 = arith.constant 0 : index
    %16 = vector.load %arg11[%c0_8, %c0_9] : memref<8x1xf32, #tpu.memory_space<vmem>>, vector<8x1xf32>
    %17 = arith.mulf %12, %16 : vector<8x1xf32>
    %cst_10 = arith.constant dense<0.000000e+00> : vector<8xf32>
    %18 = vector.multi_reduction <add>, %15, %cst_10 [1] : vector<8x8xf32> to vector<8xf32>
    %19 = vector.shape_cast %18 : vector<8xf32> to vector<8x1xf32>
    %20 = arith.addf %17, %19 : vector<8x1xf32>
    %c0_11 = arith.constant 0 : index
    %c0_12 = arith.constant 0 : index
    %21 = vector.load %arg11[%c0_11, %c0_12] : memref<8x1xf32, #tpu.memory_space<vmem>>, vector<8x1xf32>
    tpu.vector_store %arg11[%c0_11, %c0_12], %20 {strides = array<i32>} : memref<8x1xf32, #tpu.memory_space<vmem>>, vector<8x1xf32>,
    %c0_13 = arith.constant 0 : index
    %c0_14 = arith.constant 0 : index
    %22 = vector.load %arg12[%c0_13, %c0_14] : memref<8x128xf32, #tpu.memory_space<vmem>>, vector<8x128xf32>
    %23 = vector.broadcast %12 : vector<8x1xf32> to vector<8x128xf32>
    %24 = arith.mulf %23, %22 : vector<8x128xf32>
    %25 = arith.truncf %15 : vector<8x8xf32> to vector<8x8xbf16>
    %c0_15 = arith.constant 0 : index
    %c0_16 = arith.constant 0 : index
    %c0_17 = arith.constant 0 : index
    %26 = vector.load %arg5[%c0_15, %c0_16, %c0_17] : memref<1x8x128xbf16, #tpu.memory_space<vmem>>, vector<1x8x128xbf16>
    %27 = vector.shape_cast %26 : vector<1x8x128xbf16> to vector<8x128xbf16>
    %cst_18 = arith.constant dense<0.000000e+00> : vector<8x128xf32>
    %28 = tpu.matmul %25, %27, %cst_18 {dimension_numbers = #tpu.dot_dimension_numbers<[1], [0], [0], [1], [0, 0, 1, 1], [], []>} : vector<8x8xbf16>, vector<8x128xbf16>, vector<8x128xf32> -> vector<8x128xf32>
    %29 = arith.addf %24, %28 : vector<8x128xf32>
    %c0_19 = arith.constant 0 : index
    %c0_20 = arith.constant 0 : index
    %30 = vector.load %arg12[%c0_19, %c0_20] : memref<8x128xf32, #tpu.memory_space<vmem>>, vector<8x128xf32>
    tpu.vector_store %arg12[%c0_19, %c0_20], %29 {strides = array<i32>} : memref<8x128xf32, #tpu.memory_space<vmem>>, vector<8x128xf32>,
    %c0_21 = arith.constant 0 : index
    %c0_22 = arith.constant 0 : index
    %31 = vector.load %arg10[%c0_21, %c0_22] : memref<8x1xf32, #tpu.memory_space<vmem>>, vector<8x1xf32>
    tpu.vector_store %arg10[%c0_21, %c0_22], %10 {strides = array<i32>} : memref<8x1xf32, #tpu.memory_space<vmem>>, vector<8x1xf32>,
    %c0_i32_23 = arith.constant 0 : i32
    %32 = arith.cmpi eq, %arg2, %c0_i32_23 : i32
    %33 = arith.extui %32 : i1 to i32
    %c0_i32_24 = arith.constant 0 : i32
    %34 = arith.cmpi ne, %33, %c0_i32_24 : i32
    scf.if %34 {
      %c0_25 = arith.constant 0 : index
      %c0_26 = arith.constant 0 : index
      %35 = vector.load %arg11[%c0_25, %c0_26] : memref<8x1xf32, #tpu.memory_space<vmem>>, vector<8x1xf32>
      %36 = tpu.reciprocal %35 {approx = true} : vector<8x1xf32> -> vector<8x1xf32>
      %c0_27 = arith.constant 0 : index
      %c0_28 = arith.constant 0 : index
      %37 = vector.load %arg12[%c0_27, %c0_28] : memref<8x128xf32, #tpu.memory_space<vmem>>, vector<8x128xf32>
      %38 = vector.broadcast %36 : vector<8x1xf32> to vector<8x128xf32>
      %39 = arith.mulf %37, %38 : vector<8x128xf32>
      %c0_29 = arith.constant 0 : index
      %c0_30 = arith.constant 0 : index
      %c0_31 = arith.constant 0 : index
      %40 = vector.load %arg8[%c0_29, %c0_30, %c0_31] : memref<1x8x128xf32, #tpu.memory_space<vmem>>, vector<1x8x128xf32>
      %41 = vector.shape_cast %40 : vector<1x8x128xf32> to vector<8x128xf32>
      %42 = vector.shape_cast %39 : vector<8x128xf32> to vector<1x8x128xf32>
      tpu.vector_store %arg8[%c0_29, %c0_30, %c0_31], %42 {strides = array<i32>} : memref<1x8x128xf32, #tpu.memory_space<vmem>>, vector<1x8x128xf32>,
    } else {
    }
    return
  }
  func.func @transform_0(%arg0: i32, %arg1: i32, %arg2: i32) -> (i32, i32, i32) {
    %c0_i32 = arith.constant 0 : i32
    %c0_i32_0 = arith.constant 0 : i32
    return %arg0, %arg1, %c0_i32 : i32, i32, i32
  }
  func.func @transform_1(%arg0: i32, %arg1: i32, %arg2: i32) -> (i32, i32, i32) {
    %c0_i32 = arith.constant 0 : i32
    %c0_i32_0 = arith.constant 0 : i32
    return %arg0, %arg2, %c0_i32 : i32, i32, i32
  }
  func.func @transform_2(%arg0: i32, %arg1: i32, %arg2: i32) -> (i32, i32, i32) {
    %c0_i32 = arith.constant 0 : i32
    %c0_i32_0 = arith.constant 0 : i32
    return %arg0, %arg2, %c0_i32 : i32, i32, i32
  }
  func.func @transform_3(%arg0: i32, %arg1: i32, %arg2: i32) -> (i32, i32) {
    %c0_i32 = arith.constant 0 : i32
    %c0_i32_0 = arith.constant 0 : i32
    %c0_i32_1 = arith.constant 0 : i32
    return %c0_i32, %c0_i32_0 : i32, i32
  }
  func.func @transform_4(%arg0: i32, %arg1: i32, %arg2: i32) -> (i32, i32) {
    %c0_i32 = arith.constant 0 : i32
    %c0_i32_0 = arith.constant 0 : i32
    %c0_i32_1 = arith.constant 0 : i32
    return %c0_i32, %c0_i32_0 : i32, i32
  }
  func.func @transform_5(%arg0: i32, %arg1: i32, %arg2: i32) -> (i32, i32, i32) {
    %c0_i32 = arith.constant 0 : i32
    %c0_i32_0 = arith.constant 0 : i32
    return %arg0, %arg1, %c0_i32 : i32, i32, i32
  }
}

</mosaic_0001>

<bundles_post_ra>
// kernel: tpu_custom_call.1
= control target key start
LH: loop header
LB: loop body
LE: loop exit
PB: predicated region body
PF: predicated region fallthrough
CT: control target
= control target key end

     0   :  { %s1475_s0 = inlined_call_operand.hbm [shape: f32[2,8,32], index: 0, kind: input, shape index: {}]   ;;  %s1476_s1 = inlined_call_operand.hbm [shape: bf16[2,8,128], index: 1, kind: input, shape index: {}]   ;;  %s1477_s2 = inlined_call_operand.hbm [shape: bf16[2,8,128], index: 2, kind: input, shape index: {}]   ;;  %s1478_s3 = inlined_call_operand.hbm [shape: f32[32,128], index: 3, kind: input, shape index: {}]   ;;  %s1479_s4 = inlined_call_operand.vmem [shape: f32[1,128], index: 4, kind: input, shape index: {}]   ;;  %s1480_s5 = inlined_call_operand.hbm [shape: f32[2,8,128], index: 5, kind: output, shape index: {}]  }
   0x1   :  { %1499 = sst [smem:[#allocation26_spill]] %s1476_s1 }
   0x2   :  { %1500 = sst [smem:[#allocation27_spill]] %s1480_s5 }
   0x3   :  { %10 = vsyncpa [#allocation7], 0 }
   0x4   :  { %12 = vsyncpa [#allocation7 + $0x1], 0 }
   0x5   :  { %13 = vsyncpa [#allocation10], 0 }
   0x6   :  { %15 = vsyncpa [#allocation10 + $0x1], 0 }
   0x7   :  { %16 = vsyncpa [#allocation13], 0 }
   0x8   :  { %17 = vsyncpa [#allocation8], 0 }
   0x9   :  { %19 = vsyncpa [#allocation8 + $0x1], 0  ;;  %s1158_s18 = smov 0   ;;  %s1160_s19 = smov 0  }
   0xa   :  { %s1162_s20 = smov 0   ;;  %s1164_s21 = smov 0  }
   0xb   :  { %s1166_s22 = smov 0   ;;  %s1168_s23 = smov 0  }
   0xc LB: > { %1501 = sst [smem:[#allocation19_spill]] %s1094_s18  ;;  %s44_s24 = sadd.s32 1, %s1110_s22  ;;  %s1114_s23 = sphi %s1168_s23, %s25_s23   ;;  %s1110_s22 = sphi %s1166_s22, %s1535_s22   ;;  %s1106_s21 = sphi %s1164_s21, %s1534_s21   ;;  %s1102_s20 = sphi %s1162_s20, %s1533_s20   ;;  %s1098_s19 = sphi %s1160_s19, %s1537_s19   ;;  %s1094_s18 = sphi %s1158_s18, %s1536_s18  }
   0xd   : > { %1502 = sst [smem:[#allocation20_spill]] %s1102_s20  ;;  %s53_s25 = sadd.s32 1, %s1102_s20 }
   0xe   : > { %1503 = sst [smem:[#allocation21_spill]] %s1110_s22  ;;  %p46_p0 = scmp.ge.s32.totalorder %s44_s24, 2 }
   0xf   : > { %1504 = sst [smem:[#allocation22_spill]] %s1114_s23  ;;  %p1481_p1 = scmp.ne.s32.totalorder %s1102_s20, %s1098_s19 }
  0x10   : > { %p61_p2 = scmp.eq.s32.totalorder %s1114_s23, 0  ;;  %s1539_s24 = smov (%p46_p0, %s44_s24), 0 }
  0x11   : > { %1505 = sst [smem:[#allocation23_spill]] %s1539_s24  ;;  %p839_p5 = scmp.lt.s32.totalorder %s1114_s23, 2 }
  0x12   : > { %p62_p4 = por %p61_p2, %p1481_p1  ;;  %s48_s26 = ssub.s32 %s1110_s22, %s1539_s24 }
  0x13   : > { %s1203_s27 = sand.u32 1, %s1102_s20   ;;  %p51_p6 = scmp.eq.s32.totalorder %s48_s26, 0 }
  0x14   : > { %p1205_p7 = pnand %p839_p5, %p62_p4  ;;  %s251_s29 = sand.u32 1, %s1114_s23  }
  0x15   : > { %s1482_s30 = sshll.u32 %s1203_s27, 2  ;;  %s754_s7 = sshll.u32 %s1110_s22, 6 }
  0x16   : > { %s1506_s28 = scalar_select %p1205_p7, 1, 0 }
  0x17   : > { %s1212_s6 = scalar_select %p51_p6, %s1102_s20, %s53_s25  }
  0x18   : > { %s1508_s1 = sld [smem:[#allocation26_spill]]  ;;  %s255_s11 = scalar_lea.vmem [#allocation9], %s1482_s30 }
  0x19   : > { %1507 = sst [smem:[#allocation24_spill]] %s1212_s6  ;;  %s263_s12 = sshll.u32 %s255_s11, 4  ;;  %s1224_s12 = int_to_ptr.vmem [resolvable:$true] %s263_s12 }
  0x1a   : > { %s1226_s13 = scalar_lea.sflag [#allocation10], %s251_s29  ;;  %p1232_p9 = pneg %p1205_p7 }
  0x1c   : > { %s1509_s15 = scalar_select %p1232_p9, 1, 0 }
  0x1e   : > { %s1220_s10 = scalar_lea.hbm %s1508_s1, %s754_s7  ;;  %s911_s25 = scalar_lea.hbm %s1508_s1, 128 }
  0x1f   : > { %s906_s14 = scalar_lea.hbm %s1220_s10, 64  ;;  %p912_p12 = scmp.lt.u32.totalorder %s1220_s10, %s1508_s1 }
  0x20   : > { %p907_p8 = scmp.ne.s32.totalorder %s1220_s10, %s906_s14  ;;  %p913_p13 = scmp.lt.u32.totalorder %s911_s25, %s906_s14 }
  0x21   : > { %p915_p2 = scmp.lt.u32.totalorder %s906_s14, %s1220_s10 }
  0x22   : > { %p909_p10 = pnand %p1232_p9, %p907_p8  ;;  %p914_p0 = por %p913_p13, %p912_p12 }
  0x24   : > { %p910_p11 = pneg %p909_p10  ;;  %p916_p4 = por %p915_p2, %p914_p0 }
  0x26   : > { %p917_p5 = pnand %p916_p4, %p910_p11 }
  0x28   : > { %920 = shalt.err (!%p917_p5)
}
  0x29   : > { %s921_s29 = scalar_lea.vmem %s1224_s12, 64  ;;  %s1116_s9 = smov [#allocation9]  }
  0x2a   : > { %p922_p6 = scmp.ne.s32.totalorder %s1224_s12, %s921_s29  ;;  %s926_s11 = sshll.u32 %s1116_s9, 4  ;;  %s927_s11 = int_to_ptr.vmem [resolvable:$false] %s926_s11 }
  0x2b   : > { %s928_s16 = scalar_lea.vmem %s927_s11, 128  ;;  %p929_p3 = scmp.lt.s32.totalorder %s1224_s12, %s927_s11 }
  0x2c   : > { %p924_p8 = pnand %p922_p6, %p1232_p9  ;;  %p930_p1 = scmp.lt.s32.totalorder %s928_s16, %s921_s29 }
  0x2e   : > { %p925_p10 = pneg %p924_p8  ;;  %p931_p12 = por %p930_p1, %p929_p3 }
  0x30   : > { %p932_p13 = pnand %p931_p12, %p925_p10 }
  0x32   : > { %935 = shalt.err (!%p932_p13)
}
  0x33   : > { %830 = dma.hbm_to_vmem [thread:$0]  (!%p1205_p7), %s1220_s10, 64, %s1224_s12, %s1226_s13  }
  0x34   : > { %s1261_s25 = scalar_lea.hbm %s1477_s2, %s754_s7  ;;  %s1264_s26 = sadd.s32 4294967295, %s1114_s23  }
  0x35   : > { %s747_s8 = sadd.s32 4294967294, %s1114_s23   ;;  %p66_p1 = scmp.ne.s32.totalorder %s1098_s19, %s1094_s18 }
  0x36   : > { %p1490_p3 = scmp.eq.s32.totalorder %s1264_s26, 0  ;;  %p190_p11 = scmp.eq.s32.totalorder %s1264_s26, 1 }
  0x37   : > { %p196_p0 = scmp.eq.s32.totalorder %s747_s8, 1  ;;  %p748_p2 = scmp.ge.s32.totalorder %s1114_s23, 1 }
  0x38   : > { %p1274_p4 = por %p1490_p3, %p66_p1  ;;  %p1511_p5 = scmp.ne.s32.totalorder %s1102_s20, %s1098_s19 }
  0x39   : > { %p1285_p8 = por %p196_p0, %p66_p1  ;;  %p203_p10 = scmp.lt.s32.totalorder %s1114_s23, 3 }
  0x3a   : > { %s1510_s10 = scalar_select %p1274_p4, 1, 0 }
  0x3b   : > { %p1281_p6 = por %p190_p11, %p1511_p5  ;;  %p1290_p12 = pnand %p748_p2, %p203_p10 }
  0x3c   : > { %s1513_s12 = scalar_select %p1285_p8, 1, 0 }
  0x3d   : > { %s1512_s7 = scalar_select %p1281_p6, 1, 0 }
  0x3e   : > { %1514 = sst [smem:[#allocation25_spill]] %s1513_s12  ;;  %s1117_s9 = smov [#allocation12]  }
  0x3f   : > { %s1515_s29 = scalar_select %p1290_p12, 1, 0 }
  0x40   : > { %s215_s11 = sshll.u32 %s1117_s9, 4  ;;  %p820_p13 = pneg %p1290_p12  ;;  %s1294_s11 = int_to_ptr.vmem [resolvable:$true] %s215_s11 }
  0x41   : > { %s751_s16 = sshll.u32 %s1203_s27, 3  ;;  %s752_s17 = sshll.u32 %s1110_s22, 7 }
  0x42   : > { %p1301_p11 = pnand %p820_p13, %p1490_p3  ;;  %s236_s8 = scalar_lea.vmem [#allocation6], %s751_s16 }
  0x43   : > { %s244_s30 = sshll.u32 %s236_s8, 4  ;;  %s1309_s6 = scalar_lea.hbm %s1475_s0, %s752_s17  ;;  %s1332_s30 = int_to_ptr.vmem [resolvable:$true] %s244_s30 }
  0x44   : > { %s936_s23 = scalar_lea.hbm %s1478_s3, 512  ;;  %p938_p0 = pneg %p1301_p11 }
  0x45   : > { %p937_p1 = scmp.ne.s32.totalorder %s1478_s3, %s936_s23  ;;  %p943_p10 = scmp.lt.u32.totalorder %s936_s23, %s1478_s3 }
  0x47   : > { %p939_p2 = pnand %p938_p0, %p937_p1 }
  0x49   : > { %p940_p5 = pneg %p939_p2 }
  0x4b   : > { %p945_p13 = pnand %p943_p10, %p940_p5 }
  0x4d   : > { %948 = shalt.err (!%p945_p13)
}
  0x4e   : > { %s949_s1 = scalar_lea.vmem %s1294_s11, 512  ;;  %p957_p4 = scmp.lt.s32.totalorder %s1294_s11, %s1294_s11 }
  0x4f   : > { %p950_p3 = scmp.ne.s32.totalorder %s1294_s11, %s949_s1  ;;  %p958_p12 = scmp.lt.s32.totalorder %s949_s1, %s949_s1 }
  0x51   : > { %p952_p8 = pnand %p950_p3, %p938_p0  ;;  %p959_p7 = por %p958_p12, %p957_p4 }
  0x53   : > { %p953_p6 = pneg %p952_p8 }
  0x55   : > { %p960_p9 = pnand %p959_p7, %p953_p6 }
  0x57   : > { %963 = shalt.err (!%p960_p9)
}
  0x58   : > { %s1118_s18 = smov 128   ;;  %s1119_s20 = smov 8  }
  0x59   : > { %823 = dma.hbm_to_vmem [thread:$0]  (!%p1301_p11), %s1478_s3, 512, %s1294_s11, [#allocation13], %s1118_s18, %s1118_s18, %s1119_s20  }
  0x5a   : > { %s1517_s24 = sshll.u32 %s1203_s27, 2  ;;  %s233_s8 = scalar_lea.sflag [#allocation7], %s1203_s27 }
  0x5b   : > { %s1336_s12 = scalar_lea.vmem [#allocation11], %s1517_s24  ;;  %s964_s9 = scalar_lea.hbm %s1309_s6, 128 }
  0x5c   : > { %s282_s17 = sshll.u32 %s1336_s12, 4  ;;  %p965_p7 = scmp.ne.s32.totalorder %s1309_s6, %s964_s9  ;;  %s283_s17 = int_to_ptr.vmem [resolvable:$true] %s282_s17 }
  0x5d   : > { %p1518_p9 = scmp.ne.s32.totalorder %s1509_s15, 0  ;;  %s969_s14 = scalar_lea.hbm %s1475_s0, 256 }
  0x5e   : > { %p970_p6 = scmp.lt.u32.totalorder %s1309_s6, %s1475_s0  ;;  %p971_p8 = scmp.lt.u32.totalorder %s969_s14, %s964_s9 }
  0x5f   : > { %p967_p3 = pnand %p965_p7, %p1518_p9  ;;  %p973_p11 = scmp.lt.u32.totalorder %s964_s9, %s1309_s6 }
  0x60   : > { %p972_p12 = por %p971_p8, %p970_p6 }
  0x61   : > { %p968_p4 = pneg %p967_p3 }
  0x62   : > { %p974_p1 = por %p973_p11, %p972_p12 }
  0x64   : > { %p975_p0 = pnand %p974_p1, %p968_p4 }
  0x66   : > { %978 = shalt.err (!%p975_p0)
}
  0x67   : > { %s979_s27 = scalar_lea.vmem %s1332_s30, 128  ;;  %s1120_s11 = smov [#allocation6]  }
  0x68   : > { %p980_p2 = scmp.ne.s32.totalorder %s1332_s30, %s979_s27  ;;  %s984_s18 = sshll.u32 %s1120_s11, 4  ;;  %s985_s18 = int_to_ptr.vmem [resolvable:$false] %s984_s18 }
  0x69   : > { %s986_s5 = scalar_lea.vmem %s985_s18, 256  ;;  %p987_p13 = scmp.lt.s32.totalorder %s1332_s30, %s985_s18 }
  0x6a   : > { %p982_p5 = pnand %p980_p2, %p1518_p9  ;;  %p988_p7 = scmp.lt.s32.totalorder %s986_s5, %s979_s27 }
  0x6c   : > { %p983_p10 = pneg %p982_p5  ;;  %p989_p3 = por %p988_p7, %p987_p13 }
  0x6e   : > { %p990_p6 = pnand %p989_p3, %p983_p10 }
  0x70   : > { %993 = shalt.err (!%p990_p6)
}
  0x71   : > { %p1519_p4 = scmp.ne.s32.totalorder %s1506_s28, 0  ;;  %s994_s20 = scalar_lea.hbm %s1261_s25, 64 }
  0x72   : > { %p995_p8 = scmp.ne.s32.totalorder %s1261_s25, %s994_s20  ;;  %s999_s9 = scalar_lea.hbm %s1477_s2, 128 }
  0x73   : > { %827 = dma.hbm_to_vmem [thread:$0]  (!%p1519_p4), %s1309_s6, 128, %s1332_s30, %s233_s8  }
  0x74   : > { %p997_p12 = pnand %p995_p8, %p1518_p9  ;;  %p1000_p1 = scmp.lt.u32.totalorder %s1261_s25, %s1477_s2 }
  0x75   : > { %p1001_p0 = scmp.lt.u32.totalorder %s999_s9, %s994_s20  ;;  %p1003_p5 = scmp.lt.u32.totalorder %s994_s20, %s1261_s25 }
  0x76   : > { %p998_p11 = pneg %p997_p12 }
  0x77   : > { %p1002_p2 = por %p1001_p0, %p1000_p1 }
  0x79   : > { %p1004_p10 = por %p1003_p5, %p1002_p2 }
  0x7b   : > { %p1005_p13 = pnand %p1004_p10, %p998_p11 }
  0x7d   : > { %1008 = shalt.err (!%p1005_p13)
}
  0x7e   : > { %s1009_s30 = scalar_lea.vmem %s283_s17, 64  ;;  %s1121_s6 = smov [#allocation11]  }
  0x7f   : > { %p1010_p7 = scmp.ne.s32.totalorder %s283_s17, %s1009_s30  ;;  %s1014_s12 = sshll.u32 %s1121_s6, 4  ;;  %s1015_s12 = int_to_ptr.vmem [resolvable:$false] %s1014_s12 }
  0x80   : > { %s1016_s8 = scalar_lea.vmem %s1015_s12, 128  ;;  %p1017_p8 = scmp.lt.s32.totalorder %s283_s17, %s1015_s12 }
  0x81   : > { %p1012_p3 = pnand %p1010_p7, %p1518_p9  ;;  %p1018_p12 = scmp.lt.s32.totalorder %s1016_s8, %s1009_s30 }
  0x83   : > { %p1013_p6 = pneg %p1012_p3  ;;  %p1019_p4 = por %p1018_p12, %p1017_p8 }
  0x85   : > { %p1020_p0 = pnand %p1019_p4, %p1013_p6 }
  0x87   : > { %1023 = shalt.err (!%p1020_p0)
}
  0x88   : > { %p1520_p1 = scmp.ne.s32.totalorder %s1506_s28, 0  ;;  %p1521_p11 = scmp.ne.s32.totalorder %s1515_s29, 0 }
  0x89   : > { %s1384_s15 = sand.u32 (!%p1521_p11), 1, %s1098_s19   ;;  %p1522_p9 = scmp.ne.s32.totalorder (!%p1521_p11), %s1510_s10, 0 }
  0x8a   : > { %833 = dma.hbm_to_vmem [thread:$0]  (!%p1520_p1), %s1261_s25, 64, %s283_s17, %s1226_s13  }
  0x8b   : > { %291 = sbr.rel (%p1521_p11) target bundleno = 1197 (0x4ad), region = 40  ;;  %s758_s14 = sshll.u32 (!%p1521_p11), %s1384_s15, 3 }
  0x8c   : > { %s294_s22 = scalar_lea.sflag (!%p1521_p11), [#allocation7], %s1384_s15  ;;  %s297_s27 = scalar_lea.vmem (!%p1521_p11), [#allocation6], %s758_s14 }
  0x92   : > { %1077 = dma.done.wait (%p1522_p9), %s294_s22, 128  }
  0x93   : > { %1079 = vsyncadd (%p1522_p9), %s294_s22, 4294967168  ;;  %s302_s28 = sand.u32 1, %s1264_s26   ;;  %s759_s13 = sshll.u32 %s1384_s15, 2 }
  0x94   : > { %s303_s25 = scalar_lea.sflag [#allocation10], %s302_s28  ;;  %s306_s29 = scalar_lea.vmem [#allocation9], %s759_s13 }
  0x95   : > { %1081 = dma.done.wait (%p1522_p9), %s303_s25, 128  }
  0x96   : > { %1083 = vsyncadd (%p1522_p9), %s303_s25, 4294967168  ;;  %s1400_s17 = scalar_lea.vmem [#allocation11], %s759_s13  ;;  %p1523_p4 = scmp.eq.s32.totalorder %s1264_s26, 0 }
  0x98   : > { %1085 = dma.done.wait (%p1523_p4), [#allocation13], 512   ;;  %p1524_p2 = pmov %p1523_p4 }
  0x99   : > { %v1122_v0 = vmov 0.0|0.0   ;;  %vm1123_vm0 = vmmov 0   ;;  %v1124_v1 = vmov 0.0   ;;  %v362_v2 = vld [vmem:[#allocation12] sm:$0xff]  ;;  %v363_v3 = vld [vmem:[#allocation12 + $0x8] sm:$0xff]  ;;  %v364_v4 = vld [vmem:[#allocation12 + $0x10] sm:$0xff] }
  0x9a   : > { %1087 = vsyncadd (%p1524_p2), [#allocation13], 4294966784  ;;  %802 = vmatprep.subr.bf16.mxu0 %v1122_v0  ;;  %787 = vmatprep.mubr.msk.f32.mxu0 %vm1123_vm0, %v1124_v1  ;;  %v803_v5 = vpack.c.bf16 %v363_v3, %v362_v2  ;;  %v365_v6 = vld [vmem:[#allocation12 + $0x18] sm:$0xff]  ;;  %v361_v8 = vld [vmem:[%s297_s27] sm:$0xff]  ;;  %vm373_vm1 = vcmask 261120   ;;  %vm450_vm2 = vcmask 7168  }
  0x9b   : > { %790 = vmatprep.subr.bf16.mxu1 %v1124_v1  ;;  %792 = vmatprep.mubr.msk.bf16.mxu1 %vm1123_vm0, %v1124_v1  ;;  %v806_v7 = vpack.c.bf16 %v365_v6, %v364_v4  ;;  %v455_v9 = vld [vmem:[%s306_s29] sm:$0xf]  ;;  %v763_v10 = vld [vmem:[%s1479_s4] ss:$0 sm:$0xff]  ;;  %v1125_v17 = vmov -inf   ;;  %452 = vst.msk [vmem:[#allocation4] sm:$0xff] %vm450_vm2, %v1124_v1 }
  0x9c   : > { %804 = vmatpush3.bf16.msra.mxu0 %v803_v5  ;;  %791 = vmatpush3.bf16.xpose.msra.mxu1 %v455_v9  ;;  %451 = vst.msk [vmem:[#allocation3] sm:$0xff] %vm450_vm2, %v1125_v17  ;;  %vm497_vm3 = vcmask 64512   ;;  %v1126_v23 = vmov 0   ;;  %v529_v28 = vld [vmem:[%s1400_s17] sm:$0xf]  ;;  %vm533_vm4 = vcmask 1043456  }
  0x9d   : > { %805 = vmatprep.subr.bf16.mxu0 %v1122_v0  ;;  %898 = vset.pattern.permute.xlu0 %v1126_v23  ;;  %v535_v29 = vsel %vm533_vm4, %v529_v28, 0  ;;  %s767_s11 = sshll.u32 %s1106_s21, 7  ;;  %s355_s18 = scalar_lea.vmem [#allocation14], %s758_s14 }
  0x9e   : > { %899 = vset.pattern.permute.xlu1 %v1126_v23  ;;  %s608_s5 = sshll.u32 %s355_s18, 4  ;;  %s1525_s24 = sld [smem:[#allocation27_spill]]  ;;  %s1428_s5 = int_to_ptr.vmem [resolvable:$true] %s608_s5 }
  0x9f   : > { %s594_s16 = scalar_lea.sflag [#allocation8], %s1384_s15  ;;  %s1024_s1 = scalar_lea.vmem %s1428_s5, 128 }
  0xa0   : > { %807 = vmatpush3.bf16.msra.mxu0 %v806_v7  ;;  %p1025_p5 = scmp.ne.s32.totalorder %s1428_s5, %s1024_s1  ;;  %p1526_p10 = scmp.ne.s32.totalorder %s1512_s7, 0 }
  0xa1   : > { %796 = vmatprep.subr.bf16.mxu0 %v1124_v1  ;;  %s1127_s21 = smov [#allocation14]  }
  0xa2   : > { %v513_v38 = vld [vmem:[#allocation4] sm:$0xff]  ;;  %p1026_p13 = pnand %p1025_p5, %p1526_p10  ;;  %s1028_s30 = sshll.u32 %s1127_s21, 4  ;;  %s1029_s30 = int_to_ptr.vmem [resolvable:$false] %s1028_s30 }
  0xa3   : > { %788 = vmatmul.mubr.msk.f32.vlgmr.msra.gmra.mrb[0].mxu0 %vm373_vm1, %v361_v8  ;;  %v496_v24 = vld [vmem:[#allocation3] sm:$0xff]  ;;  %s1030_s6 = scalar_lea.vmem %s1029_s30, 256  ;;  %p1031_p3 = scmp.lt.s32.totalorder %s1428_s5, %s1029_s30 }
  0xa4   : > { %798 = vmatprep.mubr.msk.bf16.mxu0 %vm1123_vm0, %v1124_v1  ;;  %797 = vmatpush3.bf16.msra.mxu0 %v535_v29  ;;  %s1426_s9 = scalar_lea.hbm %s1525_s24, %s767_s11  ;;  %p1027_p7 = pneg %p1026_p13 }
  0xa5   : > { %p1032_p6 = scmp.lt.s32.totalorder %s1030_s6, %s1024_s1 }
  0xa7   : > { %p1033_p8 = por %p1032_p6, %p1031_p3 }
  0xa9   : > { %p1034_p12 = pnand %p1033_p8, %p1027_p7 }
 0x176   : > { %v443_v11 = vpop.f32.mrb[0].mxu0 }
 0x177   : > { %v444_v12 = vadd.f32 %v763_v10, %v443_v11  ;;  %v789_v13 = vpop.f32.mrb[1].mxu0 }
 0x179   : > { %v447_v14 = vmul.f32 0.25, %v444_v12 }
 0x17b   : > { %v448_v15 = vpack.c.bf16 %v447_v14, %v447_v14 }
 0x17d   : > { %449 = vst [vmem:[#allocation2] sm:$0xf] %v448_v15 }
 0x184   : > { %v454_v16 = vld [vmem:[#allocation2] sm:$0xf] }
 0x185   : > { %793 = vmatmul.mubr.bf16.vlgmr.msra.gmra.mrb[0].mxu1 %v454_v16 }
 0x258   : > { %v490_v18 = vpop.f32.mrb[0].mxu1 }
 0x259   : > { %v794_v19 = vpop.f32.mrb[1].mxu1  ;;  %v498_v20 = vsel %vm497_vm3, %v490_v18, -inf }
 0x25a   : > { %499 = vmax.xlane.f32.xlu0 %v498_v20  ;;  %v493_v21 = vpop.f32.mrb[2].mxu1 }
 0x25b   : > { %v795_v22 = vpop.f32.mrb[3].mxu1 }
 0x2e7   : > { %v500_v25 = vpop.xlane.xlu0 %499 }
 0x2e8   : > { %v501_v26 = vmax.f32 %v496_v24, %v500_v25 }
 0x2ea   : > { %v502_v27 = vsub.f32 %v496_v24, %v501_v26  ;;  %579 = vst.msk [vmem:[#allocation3] sm:$0xff] %vm450_vm2, %v501_v26  ;;  %507 = vperm.xlu0 %898, %v501_v26  }
 0x2ec   : > { %v503_v36 = vmul.f32 1.442695, %v502_v27 }
 0x369   : > { %v508_v30 = vpop.permute.xlu0 %507 }
 0x36a   : > { %v510_v31 = vsub.f32 %v490_v18, %v508_v30 }
 0x36c   : > { %v511_v32 = vmul.f32 1.442695, %v510_v31 }
 0x36e   : > { %900 = vpow2.f32 %v511_v32 }
 0x36f   : > { %902 = vpow2.f32 %v503_v36 }
 0x378   : > { %v901_v33 = vpop.eup %900 }
 0x379   : > { %v515_v34 = vsel %vm497_vm3, %v901_v33, 0.0  ;;  %v528_v35 = vpack.c.bf16 %v901_v33, %v901_v33  ;;  %v903_v37 = vpop.eup %902 }
 0x37a   : > { %516 = vadd.xlane.f32.xlu1 %v515_v34  ;;  %v514_v39 = vmul.f32 %v903_v37, %v513_v38 }
 0x37b   : > { %799 = vmatmul.mubr.msk.bf16.vlgmr.msra.gmra.mrb[4].mxu0 %vm497_vm3, %v528_v35 }
 0x38b   : > { %524 = vperm.xlu1 %899, %v903_v37  }
 0x407   : > { %v517_v40 = vpop.xlane.xlu1 %516 }
 0x408   : > { %v518_v41 = vadd.f32 %v517_v40, %v514_v39 }
 0x40a   : > { %520 = vst.msk [vmem:[#allocation4] sm:$0xff] %vm450_vm2, %v518_v41 }
 0x40b   : > { %v525_v48 = vpop.permute.xlu1 %524 }
 0x40c   : > { %v527_v49 = vmul.f32 0.0, %v525_v48 }
 0x411   : > { %v583_v42 = vld [vmem:[#allocation4] sm:$0xff] }
 0x412   : > { %904 = vrcp.f32 %v583_v42 }
 0x41c   : > { %v905_v43 = vpop.eup %904 }
 0x41d   : > { %588 = vperm.xlu1 %899, %v905_v43  }
 0x44e   : > { %v571_v44 = vpop.f32.mrb[4].mxu0 }
 0x44f   : > { %v800_v45 = vpop.f32.mrb[5].mxu0  ;;  %v577_v50 = vadd.f32 %v571_v44, %v527_v49 }
 0x450   : > { %v574_v46 = vpop.f32.mrb[6].mxu0 }
 0x451   : > { %v801_v47 = vpop.f32.mrb[7].mxu0 }
 0x49c   : > { %v589_v51 = vpop.permute.xlu1 %588 }
 0x49d   : > { %v591_v52 = vmul.f32 %v589_v51, %v577_v50 }
 0x49f   : > { %592 = vst [vmem:[%s355_s18] sm:$0xff] %v591_v52 }
 0x4a0   : > { %1037 = shalt.err (!%p1034_p12)
}
 0x4a1   : > { %s1038_s12 = scalar_lea.hbm %s1426_s9, 128  ;;  %s1042_s14 = scalar_lea.hbm %s1525_s24, 256 }
 0x4a2   : > { %p1039_p0 = scmp.ne.s32.totalorder %s1426_s9, %s1038_s12  ;;  %p1043_p9 = scmp.lt.u32.totalorder %s1426_s9, %s1525_s24 }
 0x4a3   : > { %p1044_p4 = scmp.lt.u32.totalorder %s1042_s14, %s1038_s12  ;;  %p1046_p5 = scmp.lt.u32.totalorder %s1038_s12, %s1426_s9 }
 0x4a4   : > { %p1040_p1 = pnand %p1039_p0, %p1526_p10 }
 0x4a5   : > { %p1045_p2 = por %p1044_p4, %p1043_p9 }
 0x4a6   : > { %p1041_p11 = pneg %p1040_p1 }
 0x4a7   : > { %p1047_p13 = por %p1046_p5, %p1045_p2 }
 0x4a9   : > { %p1048_p7 = pnand %p1047_p13, %p1041_p11 }
 0x4ab   : > { %1051 = shalt.err (!%p1048_p7)
}
 0x4ac   : > { %818 = dma.vmem_to_hbm [thread:$0]  (%p1526_p10), %s1428_s5, 128, %s1426_s9, %s594_s16  }
 0x4ad PF: > { %s1527_s28 = sld [smem:[#allocation19_spill]]  ;;  %s1528_s13 = sld [smem:[#allocation25_spill]] }
 0x4ae   : > { %s1529_s25 = sld [smem:[#allocation22_spill]] }
 0x4b3   : > { %s620_s29 = sand.u32 1, %s1527_s28   ;;  %p1530_p3 = scmp.ne.s32.totalorder %s1528_s13, 0 }
 0x4b4   : > { %p1531_p6 = scmp.ge.s32.totalorder %s1529_s25, 2  ;;  %s621_s17 = scalar_lea.sflag [#allocation8], %s620_s29 }
 0x4b6   : > { %p835_p8 = pnand %p1531_p6, %p1530_p3 }
 0x4b8   : > { %1089 = dma.done.wait (!%p835_p8), %s621_s17, 128  }
 0x4b9   : > { %1091 = vsyncadd (!%p835_p8), %s621_s17, 4294967168  ;;  %s25_s23 = sadd.s32 1, %s1529_s25   ;;  %s1532_s26 = sld [smem:[#allocation20_spill]] }
 0x4ba   : > { %p22_p12 = scmp.ge.s32.totalorder %s25_s23, 4   ;;  %s1533_s20 = sld [smem:[#allocation24_spill]] }
 0x4bb   : > { %s1534_s21 = sld [smem:[#allocation21_spill]]  ;;  %s1535_s22 = sld [smem:[#allocation23_spill]] }
 0x4bc   : > { %s1536_s18 = smov %s1098_s19  ;;  %24 = sbr.rel (!%p22_p12) target bundleno = 12 (0xc), region = 121 }
 0x4bf   : > { %s1537_s19 = smov %s1532_s26 }
 0x4c3   :  { %626 = vsyncpa [#allocation7], 1 }
 0x4c4   :  { %628 = vsyncpa [#allocation7 + $0x1], 1 }
 0x4c5   :  { %629 = vsyncpa [#allocation10], 1 }
 0x4c6   :  { %631 = vsyncpa [#allocation10 + $0x1], 1 }
 0x4c7   :  { %632 = vsyncpa [#allocation13], 1 }
 0x4c8   :  { %633 = vsyncpa [#allocation8], 1 }
 0x4c9   :  { %635 = vsyncpa [#allocation8 + $0x1], 1 }

</bundles_post_ra>
